<compile_context>
chip_gen: v7x
topology: tpu7x:2x2x1
jax: 0.10.0
libtpu: 0.0.40
codegen_flags: <defaults>
</compile_context>

<pallas_src>
import jax
import jax.numpy as jnp
from jax import lax
from jax.experimental import pallas as pl
from jax.experimental.pallas import tpu as pltpu


# ----------------------------- kernels ---------------------------------------

def _stage1_kernel(x_ref, w1_ref, b1_ref, o_ref):
    # conv1 (1x1, BN scale folded into w1) + bias + ReLU for one spatial tile.
    t = jnp.dot(x_ref[0], w1_ref[...], preferred_element_type=jnp.float32)
    o_ref[0] = jnp.maximum(t + b1_ref[...], 0.0).astype(o_ref.dtype)


def _make_tail_kernel(has_proj):
    def kernel(tcol_ref, xs_ref, w2_ref, b2_ref, w3_ref, b3_ref, *rest):
        if has_proj:
            ws_ref, bs_ref, o_ref = rest
        else:
            (o_ref,) = rest

        # conv2: 3x3 as one fat matmul over K = 9*Cmid (taps pre-concatenated).
        t2 = jnp.dot(tcol_ref[0], w2_ref[...], preferred_element_type=jnp.float32)
        t2 = jnp.maximum(t2 + b2_ref[...], 0.0)                 # bn2 bias + relu

        # conv3 (1x1) + bn3 bias.
        t3 = jnp.dot(t2.astype(w3_ref.dtype), w3_ref[...],
                     preferred_element_type=jnp.float32) + b3_ref[...]

        # shortcut: projection conv1x1+bn, or identity.
        if has_proj:
            sc = jnp.dot(xs_ref[0], ws_ref[...],
                         preferred_element_type=jnp.float32) + bs_ref[...]
        else:
            sc = xs_ref[0].astype(jnp.float32)

        o_ref[0] = jnp.maximum(t3 + sc, 0.0).astype(o_ref.dtype)

    return kernel


# ----------------------------- helpers ----------------------------------------

def _const_spec(shape):
    zeros = (0,) * len(shape)
    return pl.BlockSpec(shape, lambda *_: zeros)


def _pick_tile(total, row_bytes, budget_bytes=6 << 20):
    """Largest multiple-of-8 divisor of `total` whose tile fits the byte budget."""
    cap = max(8, budget_bytes // max(row_bytes, 1))
    if total <= cap:
        return total
    t = (min(cap, total) // 8) * 8
    while t >= 8:
        if total % t == 0:
            return t
        t -= 8
    return total


_VMEM_LIMIT = 48 * 1024 * 1024   # raised scoped-VMEM cap; leaves headroom on v7x (64 MiB)


# ----------------------------- forward ----------------------------------------

def block_forward_pallas(x_nchw, prep, stride):
    N, Cin, H, W = x_nchw.shape
    Cmid = prep["w1"].shape[1]
    Cout = prep["w3"].shape[1]
    has_proj = "ws" in prep

    Ho = (H - 1) // stride + 1
    Wo = (W - 1) // stride + 1
    HW, HoWo = H * W, Ho * Wo

    if not has_proj:
        assert stride == 1 and Cin == Cout, \
            "identity shortcut requires stride == 1 and Cin == Cout"

    # NHWC bf16 activations (halves DMA bytes, native MXU dtype).
    x = jnp.transpose(x_nchw, (0, 2, 3, 1)).astype(jnp.bfloat16)

    # ---- stage 1: t1 = relu(bn1(conv1x1(x))), computed once per pixel ---------
    ta = _pick_tile(HW, (Cin + Cmid) * 2)
    t1 = pl.pallas_call(
        _stage1_kernel,
        out_shape=jax.ShapeDtypeStruct((N, HW, Cmid), jnp.bfloat16),
        grid=(N, HW // ta),
        in_specs=[
            pl.BlockSpec((1, ta, Cin), lambda n, i: (n, i, 0)),
            _const_spec(prep["w1"].shape),
            _const_spec(prep["b1"].shape),
        ],
        out_specs=pl.BlockSpec((1, ta, Cmid), lambda n, i: (n, i, 0)),
        compiler_params=pltpu.CompilerParams(
            dimension_semantics=("parallel", "parallel"),
            vmem_limit_bytes=_VMEM_LIMIT),
    )(x.reshape(N, HW, Cin), prep["w1"], prep["b1"])

    # ---- glue (plain JAX): zero-pad t1 (== conv2's padding of the relu output)
    # and build the 9 strided taps, concatenated along channels so conv2 becomes
    # a single K = 9*Cmid matmul in the kernel.
    t1p = jnp.pad(t1.reshape(N, H, W, Cmid), ((0, 0), (1, 1), (1, 1), (0, 0)))
    taps = []
    for dy in range(3):
        for dx in range(3):
            sl = lax.slice(
                t1p, (0, dy, dx, 0),
                (N, dy + stride * (Ho - 1) + 1, dx + stride * (Wo - 1) + 1, Cmid),
                (1, stride, stride, 1))
            taps.append(sl.reshape(N, HoWo, Cmid))
    tcol = jnp.concatenate(taps, axis=-1)                    # (N, HoWo, 9*Cmid) bf16

    xs = x[:, ::stride, ::stride, :].reshape(N, HoWo, -1)    # shortcut input, bf16
    Csc = xs.shape[-1]

    # ---- stage 2: conv2 + bn2 + relu + conv3 + bn3 + shortcut + relu ----------
    tb = _pick_tile(HoWo, 9 * Cmid * 2 + Csc * 2 + Cmid * 4 + Cout * 4)
    in_specs = [
        pl.BlockSpec((1, tb, 9 * Cmid), lambda n, i: (n, i, 0)),
        pl.BlockSpec((1, tb, Csc), lambda n, i: (n, i, 0)),
        _const_spec(prep["w2"].shape),
        _const_spec(prep["b2"].shape),
        _const_spec(prep["w3"].shape),
        _const_spec(prep["b3"].shape),
    ]
    inputs = [tcol, xs, prep["w2"], prep["b2"], prep["w3"], prep["b3"]]
    if has_proj:
        in_specs += [_const_spec(prep["ws"].shape), _const_spec(prep["bs"].shape)]
        inputs += [prep["ws"], prep["bs"]]

    out = pl.pallas_call(
        _make_tail_kernel(has_proj),
        out_shape=jax.ShapeDtypeStruct((N, HoWo, Cout), jnp.float32),
        grid=(N, HoWo // tb),
        in_specs=in_specs,
        out_specs=pl.BlockSpec((1, tb, Cout), lambda n, i: (n, i, 0)),
        compiler_params=pltpu.CompilerParams(
            dimension_semantics=("parallel", "parallel"),
            vmem_limit_bytes=_VMEM_LIMIT),
    )(*inputs)

    out = out.reshape(N, Ho, Wo, Cout)
    return jnp.transpose(out, (0, 3, 1, 2))                  # back to NCHW


# -------------------- parameter construction / preparation --------------------

def init_block_params(key, in_channels, out_channels, stride, expansion=2):
    cmid = out_channels
    cout = out_channels * expansion
    ks = jax.random.split(key, 8)

    def bn_fold(k, c):
        k1, k2, k3, k4 = jax.random.split(k, 4)
        gamma = jax.random.uniform(k1, (c,), jnp.float32, 0.5, 1.5)
        beta = 0.1 * jax.random.normal(k2, (c,), jnp.float32)
        mean = 0.1 * jax.random.normal(k3, (c,), jnp.float32)
        var = jax.random.uniform(k4, (c,), jnp.float32, 0.5, 1.5)
        scale = gamma * lax.rsqrt(var + 1e-5)
        bias = beta - mean * scale
        return jnp.stack([scale, bias], axis=0)              # (2, c)

    p = {
        "w1": 0.2 * jax.random.normal(ks[0], (in_channels, cmid), jnp.float32),
        "sb1": bn_fold(ks[1], cmid),
        "w2": 0.2 * jax.random.normal(ks[2], (9, cmid, cmid), jnp.float32),
        "sb2": bn_fold(ks[3], cmid),
        "w3": 0.2 * jax.random.normal(ks[4], (cmid, cout), jnp.float32),
        "sb3": bn_fold(ks[5], cout),
    }
    if stride != 1 or in_channels != cout:
        p["ws"] = 0.2 * jax.random.normal(ks[6], (in_channels, cout), jnp.float32)
        p["sbs"] = bn_fold(ks[7], cout)
    return p


def prepare_params(p):
    """Fold inference-mode BN scales into adjacent conv weights (host side) and
    cast matmul operands to bf16; per-channel biases stay f32."""
    def fold(w, sb, axis):
        scale, bias = sb[0], sb[1]
        shape = [1] * w.ndim
        shape[axis] = scale.shape[0]
        return w * scale.reshape(shape), bias.reshape(1, -1).astype(jnp.float32)

    cmid = p["w1"].shape[1]
    w1, b1 = fold(p["w1"], p["sb1"], 1)
    w2, b2 = fold(p["w2"], p["sb2"], 2)
    w3, b3 = fold(p["w3"], p["sb3"], 1)
    prep = {
        "w1": w1.astype(jnp.bfloat16), "b1": b1,
        "w2": w2.reshape(9 * cmid, cmid).astype(jnp.bfloat16), "b2": b2,
        "w3": w3.astype(jnp.bfloat16), "b3": b3,
    }
    if "ws" in p:
        ws, bs = fold(p["ws"], p["sbs"], 1)
        prep["ws"] = ws.astype(jnp.bfloat16)
        prep["bs"] = bs
    return prep


# ---------------- pure-JAX reference (same bf16/folded params) ----------------

def block_forward_ref(x_nchw, prep, stride):
    x = jnp.transpose(x_nchw, (0, 2, 3, 1)).astype(jnp.bfloat16)
    cmid = prep["w1"].shape[1]

    def conv(v, w_hwio, s, pad):
        return lax.conv_general_dilated(
            v, w_hwio, (s, s), pad,
            dimension_numbers=("NHWC", "HWIO", "NHWC"),
            preferred_element_type=jnp.float32)

    y = jax.nn.relu(conv(x, prep["w1"][None, None], 1, "VALID") + prep["b1"])
    y = y.astype(jnp.bfloat16)
    w2 = prep["w2"].reshape(3, 3, cmid, cmid)
    y = jax.nn.relu(conv(y, w2, stride, ((1, 1), (1, 1))) + prep["b2"])
    y = y.astype(jnp.bfloat16)
    y = conv(y, prep["w3"][None, None], 1, "VALID") + prep["b3"]

    if "ws" in prep:
        sc = conv(x, prep["ws"][None, None], stride, "VALID") + prep["bs"]
    else:
        sc = x.astype(jnp.float32)
    out = jax.nn.relu(y + sc)
    return jnp.transpose(out, (0, 3, 1, 2))


# ----------------------------------- main --------------------------------------

if __name__ == "__main__":
    key = jax.random.PRNGKey(0)
    kx1, kx2, kp1, kp2 = jax.random.split(key, 4)

    fwd = jax.jit(block_forward_pallas, static_argnames="stride")

    # Config A: projection shortcut (stride=2, channel change). NCHW input like PyTorch.
    x1 = jax.random.normal(kx1, (2, 4, 16, 16), jnp.float32)
    p1 = prepare_params(init_block_params(kp1, in_channels=4, out_channels=8, stride=2))
    out1 = jax.block_until_ready(fwd(x1, p1, stride=2))
    ref1 = block_forward_ref(x1, p1, 2)
    assert out1.shape == (2, 16, 8, 8), out1.shape
    assert jnp.allclose(out1, ref1, atol=2e-3, rtol=2e-3), \
        float(jnp.max(jnp.abs(out1 - ref1)))

    # Config B: identity shortcut (stride=1, in_channels == expansion*out_channels).
    x2 = jax.random.normal(kx2, (2, 16, 16, 16), jnp.float32)
    p2 = prepare_params(init_block_params(kp2, in_channels=16, out_channels=8, stride=1))
    out2 = jax.block_until_ready(fwd(x2, p2, stride=1))
    ref2 = block_forward_ref(x2, p2, 1)
    assert out2.shape == (2, 16, 16, 16), out2.shape
    assert jnp.allclose(out2, ref2, atol=2e-3, rtol=2e-3), \
        float(jnp.max(jnp.abs(out2 - ref2)))

    print("KERNEL_OK")
</pallas_src>

<mosaic_0001>
module attributes {stable_mosaic.version = 11 : i64} {
  func.func @_stage1_kernel(%arg0: i32, %arg1: i32, %arg2: memref<1x256x4xbf16, #tpu.memory_space<vmem>>, %arg3: memref<4x8xbf16, #tpu.memory_space<vmem>>, %arg4: memref<1x8xf32, #tpu.memory_space<vmem>>, %arg5: memref<1x256x8xbf16, #tpu.memory_space<vmem>>) attributes {dimension_semantics = [#tpu.dimension_semantics<parallel>, #tpu.dimension_semantics<parallel>], iteration_bounds = array<i64: 2, 1>, scalar_prefetch = 0 : i64, scratch_operands = 0 : i64, tpu.core_type = #tpu.core_type<tc>, window_params = [{transform_indices = @transform_0, window_bounds = array<i64: 1, 256, 4>}, {pipeline_mode = #tpu.pipeline_mode<synchronous>, transform_indices = @transform_1, window_bounds = array<i64: 4, 8>}, {pipeline_mode = #tpu.pipeline_mode<synchronous>, transform_indices = @transform_2, window_bounds = array<i64: 1, 8>}, {transform_indices = @transform_3, window_bounds = array<i64: 1, 256, 8>}]} {
    %c0 = arith.constant 0 : index
    %c0_0 = arith.constant 0 : index
    %c0_1 = arith.constant 0 : index
    %0 = vector.load %arg2[%c0, %c0_0, %c0_1] : memref<1x256x4xbf16, #tpu.memory_space<vmem>>, vector<1x256x4xbf16>
    %1 = vector.shape_cast %0 : vector<1x256x4xbf16> to vector<256x4xbf16>
    %c0_2 = arith.constant 0 : index
    %c0_3 = arith.constant 0 : index
    %2 = vector.load %arg3[%c0_2, %c0_3] : memref<4x8xbf16, #tpu.memory_space<vmem>>, vector<4x8xbf16>
    %cst = arith.constant dense<0.000000e+00> : vector<256x8xf32>
    %3 = tpu.matmul %1, %2, %cst {dimension_numbers = #tpu.dot_dimension_numbers<[1], [0], [0], [1], [0, 0, 1, 1], [], []>} : vector<256x4xbf16>, vector<4x8xbf16>, vector<256x8xf32> -> vector<256x8xf32>
    %c0_4 = arith.constant 0 : index
    %c0_5 = arith.constant 0 : index
    %4 = vector.load %arg4[%c0_4, %c0_5] : memref<1x8xf32, #tpu.memory_space<vmem>>, vector<1x8xf32>
    %5 = vector.broadcast %4 : vector<1x8xf32> to vector<256x8xf32>
    %6 = arith.addf %3, %5 : vector<256x8xf32>
    %cst_6 = arith.constant 0.000000e+00 : f32
    %7 = vector.broadcast %cst_6 : f32 to vector<256x8xf32>
    %8 = arith.maximumf %6, %7 : vector<256x8xf32>
    %9 = arith.truncf %8 : vector<256x8xf32> to vector<256x8xbf16>
    %c0_7 = arith.constant 0 : index
    %c0_8 = arith.constant 0 : index
    %c0_9 = arith.constant 0 : index
    %10 = vector.load %arg5[%c0_7, %c0_8, %c0_9] : memref<1x256x8xbf16, #tpu.memory_space<vmem>>, vector<1x256x8xbf16>
    %11 = vector.shape_cast %10 : vector<1x256x8xbf16> to vector<256x8xbf16>
    %12 = vector.shape_cast %9 : vector<256x8xbf16> to vector<1x256x8xbf16>
    tpu.vector_store %arg5[%c0_7, %c0_8, %c0_9], %12 {strides = array<i32>} : memref<1x256x8xbf16, #tpu.memory_space<vmem>>, vector<1x256x8xbf16>,
    return
  }
  func.func @transform_0(%arg0: i32, %arg1: i32) -> (i32, i32, i32) {
    %c0_i32 = arith.constant 0 : i32
    %c0_i32_0 = arith.constant 0 : i32
    return %arg0, %arg1, %c0_i32 : i32, i32, i32
  }
  func.func @transform_1(%arg0: i32, %arg1: i32) -> (i32, i32) {
    %c0_i32 = arith.constant 0 : i32
    %c0_i32_0 = arith.constant 0 : i32
    %c0_i32_1 = arith.constant 0 : i32
    return %c0_i32, %c0_i32_0 : i32, i32
  }
  func.func @transform_2(%arg0: i32, %arg1: i32) -> (i32, i32) {
    %c0_i32 = arith.constant 0 : i32
    %c0_i32_0 = arith.constant 0 : i32
    %c0_i32_1 = arith.constant 0 : i32
    return %c0_i32, %c0_i32_0 : i32, i32
  }
  func.func @transform_3(%arg0: i32, %arg1: i32) -> (i32, i32, i32) {
    %c0_i32 = arith.constant 0 : i32
    %c0_i32_0 = arith.constant 0 : i32
    return %arg0, %arg1, %c0_i32 : i32, i32, i32
  }
}

module attributes {stable_mosaic.version = 11 : i64} {
  func.func @kernel(%arg0: i32, %arg1: i32, %arg2: memref<1x64x72xbf16, #tpu.memory_space<vmem>>, %arg3: memref<1x64x4xbf16, #tpu.memory_space<vmem>>, %arg4: memref<72x8xbf16, #tpu.memory_space<vmem>>, %arg5: memref<1x8xf32, #tpu.memory_space<vmem>>, %arg6: memref<8x16xbf16, #tpu.memory_space<vmem>>, %arg7: memref<1x16xf32, #tpu.memory_space<vmem>>, %arg8: memref<4x16xbf16, #tpu.memory_space<vmem>>, %arg9: memref<1x16xf32, #tpu.memory_space<vmem>>, %arg10: memref<1x64x16xf32, #tpu.memory_space<vmem>>) attributes {dimension_semantics = [#tpu.dimension_semantics<parallel>, #tpu.dimension_semantics<parallel>], iteration_bounds = array<i64: 2, 1>, scalar_prefetch = 0 : i64, scratch_operands = 0 : i64, tpu.core_type = #tpu.core_type<tc>, window_params = [{transform_indices = @transform_0, window_bounds = array<i64: 1, 64, 72>}, {transform_indices = @transform_1, window_bounds = array<i64: 1, 64, 4>}, {pipeline_mode = #tpu.pipeline_mode<synchronous>, transform_indices = @transform_2, window_bounds = array<i64: 72, 8>}, {pipeline_mode = #tpu.pipeline_mode<synchronous>, transform_indices = @transform_3, window_bounds = array<i64: 1, 8>}, {pipeline_mode = #tpu.pipeline_mode<synchronous>, transform_indices = @transform_4, window_bounds = array<i64: 8, 16>}, {pipeline_mode = #tpu.pipeline_mode<synchronous>, transform_indices = @transform_5, window_bounds = array<i64: 1, 16>}, {pipeline_mode = #tpu.pipeline_mode<synchronous>, transform_indices = @transform_6, window_bounds = array<i64: 4, 16>}, {pipeline_mode = #tpu.pipeline_mode<synchronous>, transform_indices = @transform_7, window_bounds = array<i64: 1, 16>}, {transform_indices = @transform_8, window_bounds = array<i64: 1, 64, 16>}]} {
    %c0 = arith.constant 0 : index
    %c0_0 = arith.constant 0 : index
    %c0_1 = arith.constant 0 : index
    %0 = vector.load %arg2[%c0, %c0_0, %c0_1] : memref<1x64x72xbf16, #tpu.memory_space<vmem>>, vector<1x64x72xbf16>
    %1 = vector.shape_cast %0 : vector<1x64x72xbf16> to vector<64x72xbf16>
    %c0_2 = arith.constant 0 : index
    %c0_3 = arith.constant 0 : index
    %2 = vector.load %arg4[%c0_2, %c0_3] : memref<72x8xbf16, #tpu.memory_space<vmem>>, vector<72x8xbf16>
    %cst = arith.constant dense<0.000000e+00> : vector<64x8xf32>
    %3 = tpu.matmul %1, %2, %cst {dimension_numbers = #tpu.dot_dimension_numbers<[1], [0], [0], [1], [0, 0, 1, 1], [], []>} : vector<64x72xbf16>, vector<72x8xbf16>, vector<64x8xf32> -> vector<64x8xf32>
    %c0_4 = arith.constant 0 : index
    %c0_5 = arith.constant 0 : index
    %4 = vector.load %arg5[%c0_4, %c0_5] : memref<1x8xf32, #tpu.memory_space<vmem>>, vector<1x8xf32>
    %5 = vector.broadcast %4 : vector<1x8xf32> to vector<64x8xf32>
    %6 = arith.addf %3, %5 : vector<64x8xf32>
    %cst_6 = arith.constant 0.000000e+00 : f32
    %7 = vector.broadcast %cst_6 : f32 to vector<64x8xf32>
    %8 = arith.maximumf %6, %7 : vector<64x8xf32>
    %9 = arith.truncf %8 : vector<64x8xf32> to vector<64x8xbf16>
    %c0_7 = arith.constant 0 : index
    %c0_8 = arith.constant 0 : index
    %10 = vector.load %arg6[%c0_7, %c0_8] : memref<8x16xbf16, #tpu.memory_space<vmem>>, vector<8x16xbf16>
    %cst_9 = arith.constant dense<0.000000e+00> : vector<64x16xf32>
    %11 = tpu.matmul %9, %10, %cst_9 {dimension_numbers = #tpu.dot_dimension_numbers<[1], [0], [0], [1], [0, 0, 1, 1], [], []>} : vector<64x8xbf16>, vector<8x16xbf16>, vector<64x16xf32> -> vector<64x16xf32>
    %c0_10 = arith.constant 0 : index
    %c0_11 = arith.constant 0 : index
    %12 = vector.load %arg7[%c0_10, %c0_11] : memref<1x16xf32, #tpu.memory_space<vmem>>, vector<1x16xf32>
    %13 = vector.broadcast %12 : vector<1x16xf32> to vector<64x16xf32>
    %14 = arith.addf %11, %13 : vector<64x16xf32>
    %c0_12 = arith.constant 0 : index
    %c0_13 = arith.constant 0 : index
    %c0_14 = arith.constant 0 : index
    %15 = vector.load %arg3[%c0_12, %c0_13, %c0_14] : memref<1x64x4xbf16, #tpu.memory_space<vmem>>, vector<1x64x4xbf16>
    %16 = vector.shape_cast %15 : vector<1x64x4xbf16> to vector<64x4xbf16>
    %c0_15 = arith.constant 0 : index
    %c0_16 = arith.constant 0 : index
    %17 = vector.load %arg8[%c0_15, %c0_16] : memref<4x16xbf16, #tpu.memory_space<vmem>>, vector<4x16xbf16>
    %cst_17 = arith.constant dense<0.000000e+00> : vector<64x16xf32>
    %18 = tpu.matmul %16, %17, %cst_17 {dimension_numbers = #tpu.dot_dimension_numbers<[1], [0], [0], [1], [0, 0, 1, 1], [], []>} : vector<64x4xbf16>, vector<4x16xbf16>, vector<64x16xf32> -> vector<64x16xf32>
    %c0_18 = arith.constant 0 : index
    %c0_19 = arith.constant 0 : index
    %19 = vector.load %arg9[%c0_18, %c0_19] : memref<1x16xf32, #tpu.memory_space<vmem>>, vector<1x16xf32>
    %20 = vector.broadcast %19 : vector<1x16xf32> to vector<64x16xf32>
    %21 = arith.addf %18, %20 : vector<64x16xf32>
    %22 = arith.addf %14, %21 : vector<64x16xf32>
    %cst_20 = arith.constant 0.000000e+00 : f32
    %23 = vector.broadcast %cst_20 : f32 to vector<64x16xf32>
    %24 = arith.maximumf %22, %23 : vector<64x16xf32>
    %c0_21 = arith.constant 0 : index
    %c0_22 = arith.constant 0 : index
    %c0_23 = arith.constant 0 : index
    %25 = vector.load %arg10[%c0_21, %c0_22, %c0_23] : memref<1x64x16xf32, #tpu.memory_space<vmem>>, vector<1x64x16xf32>
    %26 = vector.shape_cast %25 : vector<1x64x16xf32> to vector<64x16xf32>
    %27 = vector.shape_cast %24 : vector<64x16xf32> to vector<1x64x16xf32>
    tpu.vector_store %arg10[%c0_21, %c0_22, %c0_23], %27 {strides = array<i32>} : memref<1x64x16xf32, #tpu.memory_space<vmem>>, vector<1x64x16xf32>,
    return
  }
  func.func @transform_0(%arg0: i32, %arg1: i32) -> (i32, i32, i32) {
    %c0_i32 = arith.constant 0 : i32
    %c0_i32_0 = arith.constant 0 : i32
    return %arg0, %arg1, %c0_i32 : i32, i32, i32
  }
  func.func @transform_1(%arg0: i32, %arg1: i32) -> (i32, i32, i32) {
    %c0_i32 = arith.constant 0 : i32
    %c0_i32_0 = arith.constant 0 : i32
    return %arg0, %arg1, %c0_i32 : i32, i32, i32
  }
  func.func @transform_2(%arg0: i32, %arg1: i32) -> (i32, i32) {
    %c0_i32 = arith.constant 0 : i32
    %c0_i32_0 = arith.constant 0 : i32
    %c0_i32_1 = arith.constant 0 : i32
    return %c0_i32, %c0_i32_0 : i32, i32
  }
  func.func @transform_3(%arg0: i32, %arg1: i32) -> (i32, i32) {
    %c0_i32 = arith.constant 0 : i32
    %c0_i32_0 = arith.constant 0 : i32
    %c0_i32_1 = arith.constant 0 : i32
    return %c0_i32, %c0_i32_0 : i32, i32
  }
  func.func @transform_4(%arg0: i32, %arg1: i32) -> (i32, i32) {
    %c0_i32 = arith.constant 0 : i32
    %c0_i32_0 = arith.constant 0 : i32
    %c0_i32_1 = arith.constant 0 : i32
    return %c0_i32, %c0_i32_0 : i32, i32
  }
  func.func @transform_5(%arg0: i32, %arg1: i32) -> (i32, i32) {
    %c0_i32 = arith.constant 0 : i32
    %c0_i32_0 = arith.constant 0 : i32
    %c0_i32_1 = arith.constant 0 : i32
    return %c0_i32, %c0_i32_0 : i32, i32
  }
  func.func @transform_6(%arg0: i32, %arg1: i32) -> (i32, i32) {
    %c0_i32 = arith.constant 0 : i32
    %c0_i32_0 = arith.constant 0 : i32
    %c0_i32_1 = arith.constant 0 : i32
    return %c0_i32, %c0_i32_0 : i32, i32
  }
  func.func @transform_7(%arg0: i32, %arg1: i32) -> (i32, i32) {
    %c0_i32 = arith.constant 0 : i32
    %c0_i32_0 = arith.constant 0 : i32
    %c0_i32_1 = arith.constant 0 : i32
    return %c0_i32, %c0_i32_0 : i32, i32
  }
  func.func @transform_8(%arg0: i32, %arg1: i32) -> (i32, i32, i32) {
    %c0_i32 = arith.constant 0 : i32
    %c0_i32_0 = arith.constant 0 : i32
    return %arg0, %arg1, %c0_i32 : i32, i32, i32
  }
}

</mosaic_0001>

<bundles_post_ra>
// kernel: block_forward_pallas.2
= control target key start
LH: loop header
LB: loop body
LE: loop exit
PB: predicated region body
PF: predicated region fallthrough
CT: control target
= control target key end

     0   :  { %s1074_s12 = smov 0   ;;  %s1076_s13 = smov 0   ;;  %s1254_s0 = inlined_call_operand.vmem [shape: bf16[2,256,4], index: 0, kind: input, shape index: {}]   ;;  %s1255_s1 = inlined_call_operand.vmem [shape: bf16[4,8], index: 1, kind: input, shape index: {}]   ;;  %s1256_s2 = inlined_call_operand.vmem [shape: f32[1,8], index: 2, kind: input, shape index: {}]   ;;  %s1257_s3 = inlined_call_operand.vmem [shape: bf16[2,256,8], index: 3, kind: output, shape index: {}]  }
   0x1   :  { %s1078_s14 = smov 0  }
   0x2 LB: > { %s25_s15 = sadd.s32 1, %s1048_s13  ;;  %p829_p0 = scmp.ge.s32.totalorder %s1052_s14, 1  ;;  %s1052_s14 = sphi %s1078_s14, %s13_s14   ;;  %s1048_s13 = sphi %s1076_s13, %s1259_s13   ;;  %s1044_s12 = sphi %s1074_s12, %s1258_s12  }
   0x3   : > { %p27_p1 = scmp.ge.s32.totalorder %s25_s15, 2  ;;  %p158_p2 = scmp.lt.s32.totalorder %s1052_s14, 3 }
   0x5   : > { %s1261_s15 = smov (%p27_p1, %s25_s15), 0  ;;  %p159_p3 = pnand %p829_p0, %p158_p2 }
   0x6   : > { %v243_v0 = vld [vmem:[%s1255_s1] sm:$0x3] (!%p159_p3)  ;;  %vm380_vm0 = vcmask (!%p159_p3), 1041408   ;;  %p191_p4 = scmp.lt.s32.totalorder (!%p159_p3), %s1044_s12, 1  ;;  %vm331_vm1 = vcmask (!%p159_p3), 31744   ;;  %vm705_vm2 = vcmask (!%p159_p3), 60416  }
   0x7   : > { %162 = sbr.rel (%p159_p3) target bundleno = 266 (0x10a), region = 32  ;;  %988 = vmatprep.subr.msk.bf16.mxu0 (!%p159_p3), %vm380_vm0, %v243_v0  ;;  %989 = vmatprep.subr.msk.bf16.mxu1 (!%p159_p3), %vm380_vm0, %v243_v0  ;;  %v382_v1 = vsel (!%p159_p3), %vm380_vm0, %v243_v0, 0  ;;  %v1140_v18 = vld [vmem:[%s1256_s2] ss:$0 sm:$0xff] (!%p159_p3) }
   0x8   : > { %953 = vmatpush3.bf16.msra.mxu0 (!%p159_p3), %v382_v1  ;;  %987 = vmatpush3.bf16.msra.mxu1 (!%p159_p3), %v382_v1 }
   0xe   : > { %s1263_s12 = smov (!%p191_p4, %s1044_s12), 1 }
   0xf   : > { %s901_s18 = sshll.u32 %s1263_s12, 7 }
  0x10   : > { %s1103_s21 = scalar_lea.vmem %s1254_s0, %s901_s18  ;;  %s1152_s26 = scalar_lea.vmem %s1257_s3, %s901_s18 }
  0x11   : > { %v1014_v2 = vld [vmem:[%s1103_s21] sm:$0xff]   ;;  %v1016_v4 = vld [vmem:[%s1103_s21 + $0x8] sm:$0xff]   ;;  %v1018_v6 = vld [vmem:[%s1103_s21 + $0x10] sm:$0xff]  }
  0x12   : > { %v1015_v3 = vld [vmem:[%s1103_s21 + $0x40] sm:$0xff]   ;;  %954 = vmatprep.mubr.msk.bf16.mxu0 %vm331_vm1, %v1014_v2  ;;  %v1017_v5 = vld [vmem:[%s1103_s21 + $0x48] sm:$0xff]   ;;  %v1019_v7 = vld [vmem:[%s1103_s21 + $0x50] sm:$0xff]  }
  0x13   : > { %970 = vmatprep.mubr.msk.bf16.mxu1 %vm331_vm1, %v1015_v3  ;;  %955 = vmatmul.mubr.msk.bf16.vlgmr.msra.gmra.mrb[0].mxu0 %vm331_vm1, %v1016_v4  ;;  %v1020_v8 = vld [vmem:[%s1103_s21 + $0x18] sm:$0xff]   ;;  %v1022_v10 = vld [vmem:[%s1103_s21 + $0x20] sm:$0xff]   ;;  %v1024_v12 = vld [vmem:[%s1103_s21 + $0x28] sm:$0xff]  }
  0x14   : > { %971 = vmatmul.mubr.msk.bf16.vlgmr.msra.gmra.mrb[0].mxu1 %vm331_vm1, %v1017_v5  ;;  %958 = vmatprep.mubr.msk.bf16.mxu0 %vm331_vm1, %v1018_v6  ;;  %v1021_v9 = vld [vmem:[%s1103_s21 + $0x58] sm:$0xff]   ;;  %v1023_v11 = vld [vmem:[%s1103_s21 + $0x60] sm:$0xff]   ;;  %v1025_v13 = vld [vmem:[%s1103_s21 + $0x68] sm:$0xff]  }
  0x15   : > { %974 = vmatprep.mubr.msk.bf16.mxu1 %vm331_vm1, %v1019_v7  ;;  %v1026_v14 = vld [vmem:[%s1103_s21 + $0x30] sm:$0xff]   ;;  %v1028_v16 = vld [vmem:[%s1103_s21 + $0x38] sm:$0xff]  }
  0x16   : > { %v1027_v15 = vld [vmem:[%s1103_s21 + $0x70] sm:$0xff]   ;;  %v1029_v17 = vld [vmem:[%s1103_s21 + $0x78] sm:$0xff]  }
  0x1b   : > { %959 = vmatmul.mubr.msk.bf16.gmra.mrb[4].mxu0 %vm331_vm1, %v1020_v8 }
  0x1c   : > { %975 = vmatmul.mubr.msk.bf16.gmra.mrb[4].mxu1 %vm331_vm1, %v1021_v9  ;;  %962 = vmatprep.mubr.msk.bf16.mxu0 %vm331_vm1, %v1022_v10 }
  0x1d   : > { %978 = vmatprep.mubr.msk.bf16.mxu1 %vm331_vm1, %v1023_v11 }
  0x23   : > { %963 = vmatmul.mubr.msk.bf16.gmra.mrb[8].mxu0 %vm331_vm1, %v1024_v12 }
  0x24   : > { %979 = vmatmul.mubr.msk.bf16.gmra.mrb[8].mxu1 %vm331_vm1, %v1025_v13  ;;  %966 = vmatprep.mubr.msk.bf16.mxu0 %vm331_vm1, %v1026_v14 }
  0x25   : > { %982 = vmatprep.mubr.msk.bf16.mxu1 %vm331_vm1, %v1027_v15 }
  0x2b   : > { %967 = vmatmul.mubr.msk.bf16.gmra.mrb[12].mxu0 %vm331_vm1, %v1028_v16 }
  0x2c   : > { %983 = vmatmul.mubr.msk.bf16.gmra.mrb[12].mxu1 %vm331_vm1, %v1029_v17 }
  0xe6   : > { %v956_v19 = vpop.f32.mrb[0].mxu0 }
  0xe7   : > { %v427_v20 = vadd.f32 %v956_v19, %v1140_v18  ;;  %v972_v21 = vpop.f32.mrb[0].mxu1  ;;  %v418_v22 = vpop.f32.mrb[1].mxu0 }
  0xe8   : > { %v491_v23 = vadd.f32 %v972_v21, %v1140_v18  ;;  %v419_v24 = vadd.f32 %v1140_v18, %v418_v22  ;;  %v482_v25 = vpop.f32.mrb[1].mxu1  ;;  %v957_v26 = vpop.f32.mrb[2].mxu0 }
  0xe9   : > { %v547_v27 = vmax.f32 %v427_v20, 0.0  ;;  %v483_v28 = vadd.f32 %v1140_v18, %v482_v25  ;;  %v430_v29 = vadd.f32 %v957_v26, %v1140_v18  ;;  %v973_v30 = vpop.f32.mrb[2].mxu1  ;;  %v421_v31 = vpop.f32.mrb[3].mxu0 }
  0xea   : > { %v563_v32 = vmax.f32 %v491_v23, 0.0  ;;  %v545_v33 = vmax.f32 %v419_v24, 0.0  ;;  %v494_v34 = vadd.f32 %v973_v30, %v1140_v18  ;;  %v422_v35 = vadd.f32 %v1140_v18, %v421_v31  ;;  %v485_v36 = vpop.f32.mrb[3].mxu1 }
  0xeb   : > { %v905_v37 = vpack.c.bf16 %v547_v27, %v547_v27  ;;  %v561_v38 = vmax.f32 %v483_v28, 0.0  ;;  %v548_v39 = vmax.f32 %v430_v29, 0.0  ;;  %v486_v40 = vadd.f32 %v1140_v18, %v485_v36 }
  0xec   : > { %v921_v41 = vpack.c.bf16 %v563_v32, %v563_v32  ;;  %v903_v42 = vpack.c.bf16 %v545_v33, %v545_v33  ;;  %v564_v43 = vmax.f32 %v494_v34, 0.0  ;;  %v546_v44 = vmax.f32 %v422_v35, 0.0 }
  0xed   : > { %708 = vst.msk [vmem:[%s1152_s26 + $0x8] sm:$0xf] %vm705_vm2, %v905_v37  ;;  %v919_v45 = vpack.c.bf16 %v561_v38, %v561_v38  ;;  %v906_v46 = vpack.c.bf16 %v548_v39, %v548_v39  ;;  %v562_v47 = vmax.f32 %v486_v40, 0.0 }
  0xee   : > { %724 = vst.msk [vmem:[%s1152_s26 + $0x48] sm:$0xf] %vm705_vm2, %v921_v41  ;;  %706 = vst.msk [vmem:[%s1152_s26] sm:$0xf] %vm705_vm2, %v903_v42  ;;  %v922_v48 = vpack.c.bf16 %v564_v43, %v564_v43  ;;  %v904_v49 = vpack.c.bf16 %v546_v44, %v546_v44  ;;  %v960_v50 = vpop.f32.mrb[4].mxu0 }
  0xef   : > { %722 = vst.msk [vmem:[%s1152_s26 + $0x40] sm:$0xf] %vm705_vm2, %v919_v45  ;;  %709 = vst.msk [vmem:[%s1152_s26 + $0xc] sm:$0xf] %vm705_vm2, %v906_v46  ;;  %v920_v51 = vpack.c.bf16 %v562_v47, %v562_v47  ;;  %v443_v52 = vadd.f32 %v960_v50, %v1140_v18  ;;  %v976_v53 = vpop.f32.mrb[4].mxu1  ;;  %v434_v54 = vpop.f32.mrb[5].mxu0 }
  0xf0   : > { %725 = vst.msk [vmem:[%s1152_s26 + $0x4c] sm:$0xf] %vm705_vm2, %v922_v48  ;;  %707 = vst.msk [vmem:[%s1152_s26 + $0x4] sm:$0xf] %vm705_vm2, %v904_v49  ;;  %v507_v55 = vadd.f32 %v976_v53, %v1140_v18  ;;  %v435_v56 = vadd.f32 %v1140_v18, %v434_v54  ;;  %v498_v57 = vpop.f32.mrb[5].mxu1  ;;  %v961_v58 = vpop.f32.mrb[6].mxu0 }
  0xf1   : > { %723 = vst.msk [vmem:[%s1152_s26 + $0x44] sm:$0xf] %vm705_vm2, %v920_v51  ;;  %v551_v59 = vmax.f32 %v443_v52, 0.0  ;;  %v499_v60 = vadd.f32 %v1140_v18, %v498_v57  ;;  %v446_v61 = vadd.f32 %v961_v58, %v1140_v18  ;;  %v977_v62 = vpop.f32.mrb[6].mxu1  ;;  %v437_v63 = vpop.f32.mrb[7].mxu0 }
  0xf2   : > { %v567_v0 = vmax.f32 %v507_v55, 0.0  ;;  %v549_v1 = vmax.f32 %v435_v56, 0.0  ;;  %v510_v2 = vadd.f32 %v977_v62, %v1140_v18  ;;  %v438_v3 = vadd.f32 %v1140_v18, %v437_v63  ;;  %v501_v4 = vpop.f32.mrb[7].mxu1 }
  0xf3   : > { %v909_v5 = vpack.c.bf16 %v551_v59, %v551_v59  ;;  %v565_v6 = vmax.f32 %v499_v60, 0.0  ;;  %v552_v7 = vmax.f32 %v446_v61, 0.0  ;;  %v502_v8 = vadd.f32 %v1140_v18, %v501_v4 }
  0xf4   : > { %v925_v9 = vpack.c.bf16 %v567_v0, %v567_v0  ;;  %v907_v10 = vpack.c.bf16 %v549_v1, %v549_v1  ;;  %v568_v11 = vmax.f32 %v510_v2, 0.0  ;;  %v550_v12 = vmax.f32 %v438_v3, 0.0 }
  0xf5   : > { %712 = vst.msk [vmem:[%s1152_s26 + $0x18] sm:$0xf] %vm705_vm2, %v909_v5  ;;  %v923_v13 = vpack.c.bf16 %v565_v6, %v565_v6  ;;  %v910_v14 = vpack.c.bf16 %v552_v7, %v552_v7  ;;  %v566_v15 = vmax.f32 %v502_v8, 0.0 }
  0xf6   : > { %728 = vst.msk [vmem:[%s1152_s26 + $0x58] sm:$0xf] %vm705_vm2, %v925_v9  ;;  %710 = vst.msk [vmem:[%s1152_s26 + $0x10] sm:$0xf] %vm705_vm2, %v907_v10  ;;  %v926_v16 = vpack.c.bf16 %v568_v11, %v568_v11  ;;  %v908_v17 = vpack.c.bf16 %v550_v12, %v550_v12  ;;  %v964_v19 = vpop.f32.mrb[8].mxu0 }
  0xf7   : > { %726 = vst.msk [vmem:[%s1152_s26 + $0x50] sm:$0xf] %vm705_vm2, %v923_v13  ;;  %713 = vst.msk [vmem:[%s1152_s26 + $0x1c] sm:$0xf] %vm705_vm2, %v910_v14  ;;  %v924_v20 = vpack.c.bf16 %v566_v15, %v566_v15  ;;  %v459_v21 = vadd.f32 %v964_v19, %v1140_v18  ;;  %v980_v22 = vpop.f32.mrb[8].mxu1  ;;  %v450_v23 = vpop.f32.mrb[9].mxu0 }
  0xf8   : > { %729 = vst.msk [vmem:[%s1152_s26 + $0x5c] sm:$0xf] %vm705_vm2, %v926_v16  ;;  %711 = vst.msk [vmem:[%s1152_s26 + $0x14] sm:$0xf] %vm705_vm2, %v908_v17  ;;  %v523_v24 = vadd.f32 %v980_v22, %v1140_v18  ;;  %v451_v25 = vadd.f32 %v1140_v18, %v450_v23  ;;  %v514_v26 = vpop.f32.mrb[9].mxu1  ;;  %v965_v27 = vpop.f32.mrb[10].mxu0 }
  0xf9   : > { %727 = vst.msk [vmem:[%s1152_s26 + $0x54] sm:$0xf] %vm705_vm2, %v924_v20  ;;  %v555_v28 = vmax.f32 %v459_v21, 0.0  ;;  %v515_v29 = vadd.f32 %v1140_v18, %v514_v26  ;;  %v462_v30 = vadd.f32 %v965_v27, %v1140_v18  ;;  %v981_v31 = vpop.f32.mrb[10].mxu1  ;;  %v453_v32 = vpop.f32.mrb[11].mxu0 }
  0xfa   : > { %v571_v33 = vmax.f32 %v523_v24, 0.0  ;;  %v553_v34 = vmax.f32 %v451_v25, 0.0  ;;  %v526_v35 = vadd.f32 %v981_v31, %v1140_v18  ;;  %v454_v36 = vadd.f32 %v1140_v18, %v453_v32  ;;  %v517_v37 = vpop.f32.mrb[11].mxu1 }
  0xfb   : > { %v913_v38 = vpack.c.bf16 %v555_v28, %v555_v28  ;;  %v569_v39 = vmax.f32 %v515_v29, 0.0  ;;  %v556_v40 = vmax.f32 %v462_v30, 0.0  ;;  %v518_v41 = vadd.f32 %v1140_v18, %v517_v37 }
  0xfc   : > { %v929_v42 = vpack.c.bf16 %v571_v33, %v571_v33  ;;  %v911_v43 = vpack.c.bf16 %v553_v34, %v553_v34  ;;  %v572_v44 = vmax.f32 %v526_v35, 0.0  ;;  %v554_v45 = vmax.f32 %v454_v36, 0.0 }
  0xfd   : > { %716 = vst.msk [vmem:[%s1152_s26 + $0x28] sm:$0xf] %vm705_vm2, %v913_v38  ;;  %v927_v46 = vpack.c.bf16 %v569_v39, %v569_v39  ;;  %v914_v47 = vpack.c.bf16 %v556_v40, %v556_v40  ;;  %v570_v48 = vmax.f32 %v518_v41, 0.0 }
  0xfe   : > { %732 = vst.msk [vmem:[%s1152_s26 + $0x68] sm:$0xf] %vm705_vm2, %v929_v42  ;;  %714 = vst.msk [vmem:[%s1152_s26 + $0x20] sm:$0xf] %vm705_vm2, %v911_v43  ;;  %v930_v49 = vpack.c.bf16 %v572_v44, %v572_v44  ;;  %v912_v50 = vpack.c.bf16 %v554_v45, %v554_v45  ;;  %v968_v51 = vpop.f32.mrb[12].mxu0 }
  0xff   : > { %730 = vst.msk [vmem:[%s1152_s26 + $0x60] sm:$0xf] %vm705_vm2, %v927_v46  ;;  %717 = vst.msk [vmem:[%s1152_s26 + $0x2c] sm:$0xf] %vm705_vm2, %v914_v47  ;;  %v928_v52 = vpack.c.bf16 %v570_v48, %v570_v48  ;;  %v475_v53 = vadd.f32 %v968_v51, %v1140_v18  ;;  %v984_v54 = vpop.f32.mrb[12].mxu1  ;;  %v466_v55 = vpop.f32.mrb[13].mxu0 }
 0x100   : > { %733 = vst.msk [vmem:[%s1152_s26 + $0x6c] sm:$0xf] %vm705_vm2, %v930_v49  ;;  %715 = vst.msk [vmem:[%s1152_s26 + $0x24] sm:$0xf] %vm705_vm2, %v912_v50  ;;  %v539_v56 = vadd.f32 %v984_v54, %v1140_v18  ;;  %v467_v57 = vadd.f32 %v1140_v18, %v466_v55  ;;  %v530_v58 = vpop.f32.mrb[13].mxu1  ;;  %v969_v59 = vpop.f32.mrb[14].mxu0 }
 0x101   : > { %731 = vst.msk [vmem:[%s1152_s26 + $0x64] sm:$0xf] %vm705_vm2, %v928_v52  ;;  %v559_v60 = vmax.f32 %v475_v53, 0.0  ;;  %v531_v61 = vadd.f32 %v1140_v18, %v530_v58  ;;  %v478_v62 = vadd.f32 %v969_v59, %v1140_v18  ;;  %v985_v63 = vpop.f32.mrb[14].mxu1  ;;  %v469_v0 = vpop.f32.mrb[15].mxu0 }
 0x102   : > { %v575_v1 = vmax.f32 %v539_v56, 0.0  ;;  %v557_v2 = vmax.f32 %v467_v57, 0.0  ;;  %v542_v3 = vadd.f32 %v985_v63, %v1140_v18  ;;  %v470_v4 = vadd.f32 %v1140_v18, %v469_v0  ;;  %v533_v5 = vpop.f32.mrb[15].mxu1 }
 0x103   : > { %v917_v6 = vpack.c.bf16 %v559_v60, %v559_v60  ;;  %v573_v7 = vmax.f32 %v531_v61, 0.0  ;;  %v560_v8 = vmax.f32 %v478_v62, 0.0  ;;  %v534_v9 = vadd.f32 %v1140_v18, %v533_v5 }
 0x104   : > { %v933_v10 = vpack.c.bf16 %v575_v1, %v575_v1  ;;  %v915_v11 = vpack.c.bf16 %v557_v2, %v557_v2  ;;  %v576_v12 = vmax.f32 %v542_v3, 0.0  ;;  %v558_v13 = vmax.f32 %v470_v4, 0.0 }
 0x105   : > { %720 = vst.msk [vmem:[%s1152_s26 + $0x38] sm:$0xf] %vm705_vm2, %v917_v6  ;;  %v931_v14 = vpack.c.bf16 %v573_v7, %v573_v7  ;;  %v918_v15 = vpack.c.bf16 %v560_v8, %v560_v8  ;;  %v574_v16 = vmax.f32 %v534_v9, 0.0 }
 0x106   : > { %736 = vst.msk [vmem:[%s1152_s26 + $0x78] sm:$0xf] %vm705_vm2, %v933_v10  ;;  %718 = vst.msk [vmem:[%s1152_s26 + $0x30] sm:$0xf] %vm705_vm2, %v915_v11  ;;  %v934_v17 = vpack.c.bf16 %v576_v12, %v576_v12  ;;  %v916_v19 = vpack.c.bf16 %v558_v13, %v558_v13 }
 0x107   : > { %734 = vst.msk [vmem:[%s1152_s26 + $0x70] sm:$0xf] %vm705_vm2, %v931_v14  ;;  %721 = vst.msk [vmem:[%s1152_s26 + $0x3c] sm:$0xf] %vm705_vm2, %v918_v15  ;;  %v932_v18 = vpack.c.bf16 %v574_v16, %v574_v16 }
 0x108   : > { %737 = vst.msk [vmem:[%s1152_s26 + $0x7c] sm:$0xf] %vm705_vm2, %v934_v17  ;;  %719 = vst.msk [vmem:[%s1152_s26 + $0x34] sm:$0xf] %vm705_vm2, %v916_v19 }
 0x109   : > { %735 = vst.msk [vmem:[%s1152_s26 + $0x74] sm:$0xf] %vm705_vm2, %v932_v18 }
 0x10a PF: > { %s13_s14 = sadd.s32 1, %s1052_s14   ;;  %s1258_s12 = smov %s1048_s13 }
 0x10b   : > { %p10_p5 = scmp.ge.s32.totalorder %s13_s14, 4   ;;  %s1259_s13 = smov %s1261_s15 }
 0x10d   :  { %12 = sbr.rel (!%p10_p5) target bundleno = 2 (0x2), region = 62 }

// kernel: block_forward_pallas.3
= control target key start
LH: loop header
LB: loop body
LE: loop exit
PB: predicated region body
PF: predicated region fallthrough
CT: control target
= control target key end

     0   :  { %13 = vsyncpa [#allocation3], 0  ;;  %s1384_s0 = inlined_call_operand.vmem [shape: bf16[2,64,72], index: 0, kind: input, shape index: {}]   ;;  %s1385_s1 = inlined_call_operand.vmem [shape: bf16[2,64,4], index: 1, kind: input, shape index: {}]   ;;  %s1386_s2 = inlined_call_operand.vmem [shape: bf16[72,8], index: 2, kind: input, shape index: {}]   ;;  %s1387_s3 = inlined_call_operand.vmem [shape: f32[1,8], index: 3, kind: input, shape index: {}]   ;;  %s1388_s4 = inlined_call_operand.vmem [shape: bf16[8,16], index: 4, kind: input, shape index: {}]   ;;  %s1389_s5 = inlined_call_operand.vmem [shape: f32[1,16], index: 5, kind: input, shape index: {}]   ;;  %s1390_s6 = inlined_call_operand.vmem [shape: bf16[4,16], index: 6, kind: input, shape index: {}]   ;;  %s1391_s7 = inlined_call_operand.vmem [shape: f32[1,16], index: 7, kind: input, shape index: {}]   ;;  %s1392_s8 = inlined_call_operand.hbm [shape: f32[2,64,16], index: 8, kind: output, shape index: {}]  }
   0x1   :  { %15 = vsyncpa [#allocation3 + $0x1], 0  ;;  %s1210_s27 = smov 0   ;;  %s1212_s28 = smov 0  }
   0x2   :  { %s1214_s29 = smov 0   ;;  %s1216_s30 = smov 0  }
   0x3   :  { %s1218_s9 = smov 0   ;;  %s1220_s10 = smov 0  }
   0x4 LB: > { %s882_s11 = sadd.s32 4294967295, %s1160_s10   ;;  %s883_s12 = sadd.s32 4294967294, %s1160_s10   ;;  %s1160_s10 = sphi %s1220_s10, %s21_s10   ;;  %s1156_s9 = sphi %s1218_s9, %s1399_s9   ;;  %s1152_s30 = sphi %s1216_s30, %s1398_s30   ;;  %s1148_s29 = sphi %s1214_s29, %s1397_s29   ;;  %s1144_s28 = sphi %s1212_s28, %s1396_s28   ;;  %s1140_s27 = sphi %s1210_s27, %s1395_s27  }
   0x5   : > { %s33_s13 = sadd.s32 1, %s1156_s9  ;;  %s224_s14 = sadd.s32 1, %s1148_s29 }
   0x6   : > { %p35_p0 = scmp.ge.s32.totalorder %s33_s13, 2  ;;  %p234_p1 = scmp.ne.s32.totalorder %s1148_s29, %s1144_s28 }
   0x7   : > { %p235_p2 = scmp.eq.s32.totalorder %s882_s11, 1  ;;  %p240_p3 = scmp.ne.s32.totalorder %s1144_s28, %s1140_s27 }
   0x8   : > { %s1401_s13 = smov (%p35_p0, %s33_s13), 0  ;;  %p241_p5 = scmp.eq.s32.totalorder %s883_s12, 1 }
   0x9   : > { %p1250_p4 = por %p235_p2, %p234_p1  ;;  %s219_s16 = ssub.s32 %s1156_s9, %s1401_s13 }
   0xa   : > { %p886_p6 = scmp.ge.s32.totalorder %s1160_s10, 1  ;;  %p222_p7 = scmp.eq.s32.totalorder %s219_s16, 0 }
   0xb   : > { %p1257_p8 = por %p241_p5, %p240_p3  ;;  %p303_p9 = scmp.lt.s32.totalorder %s1160_s10, 3 }
   0xc   : > { %s1263_s18 = scalar_select %p222_p7, %s1148_s29, %s224_s14  }
   0xd   : > { %p304_p10 = pnand %p886_p6, %p303_p9 }
   0xe   : > { %v1069_v0 = vld [vmem:[%s1386_s2] sm:$0xff] (!%p304_p10)   ;;  %v1070_v1 = vld [vmem:[%s1386_s2 + $0x8] sm:$0xff] (!%p304_p10)   ;;  %p351_p11 = scmp.lt.s32.totalorder (!%p304_p10), %s1152_s30, 1  ;;  %v1071_v2 = vld [vmem:[%s1386_s2 + $0x10] sm:$0xff] (!%p304_p10)   ;;  %vm443_vm0 = vcmask (!%p304_p10), 588800   ;;  %vm456_vm1 = vcmask (!%p304_p10), 1043456  }
   0xf   : > { %307 = sbr.rel (%p304_p10) target bundleno = 515 (0x203), region = 52  ;;  %947 = vmatprep.subr.bf16.mxu0 (!%p304_p10), %v1069_v0  ;;  %v1072_v4 = vld [vmem:[%s1386_s2 + $0x18] sm:$0xff] (!%p304_p10)   ;;  %v1073_v5 = vld [vmem:[%s1386_s2 + $0x20] ss:$0 sps:$4 sm:$0xff] (!%p304_p10)   ;;  %vm675_vm2 = vcmask (!%p304_p10), 1041408   ;;  %vm545_vm3 = vcmask (!%p304_p10), 64512  }
  0x10   : > { %948 = vmatpush3.bf16.msra.mxu0 (!%p304_p10), %v1069_v0  ;;  %v458_v6 = vsel (!%p304_p10), %vm456_vm1, %v1073_v5, 0  ;;  %v537_v10 = vld [vmem:[%s1388_s4] sm:$0xf] (!%p304_p10)  ;;  %vm662_vm4 = vcmask (!%p304_p10), 31744   ;;  %vm760_vm5 = vcmask (!%p304_p10), 130048   ;;  %s927_s11 = sshll.u32 (!%p304_p10), %s1152_s30, 10 }
  0x11   : > { %949 = vmatprep.subr.bf16.mxu0 (!%p304_p10), %v1070_v1  ;;  %1010 = vmatprep.subr.msk.bf16.mxu1 (!%p304_p10), %vm456_vm1, %v537_v10  ;;  %v559_v11 = vsel (!%p304_p10), %vm456_vm1, %v537_v10, 0  ;;  %v634_v12 = vld [vmem:[%s1390_s6] sm:$0x3] (!%p304_p10)  ;;  %s1329_s19 = scalar_lea.hbm (!%p304_p10), %s1392_s8, %s927_s11  ;;  %s1162_s20 = smov (!%p304_p10), [#allocation2]  }
  0x12   : > { %966 = vmatpush3.bf16.msra.mxu1 (!%p304_p10), %v559_v11  ;;  %v677_v13 = vsel (!%p304_p10), %vm675_vm2, %v634_v12, 0  ;;  %v892_v14 = vld [vmem:[%s1387_s3] ss:$0 sm:$0xff] (!%p304_p10)  ;;  %s1086_s21 = sshll.u32 (!%p304_p10), %s1162_s20, 4  ;;  %s1087_s21 = int_to_ptr.vmem [resolvable:$false] %s1086_s21 }
  0x13   : > { %1011 = vmatprep.subr.msk.bf16.mxu1 (!%p304_p10), %vm675_vm2, %v634_v12  ;;  %v906_v47 = vld [vmem:[%s1389_s5] ss:$0 sm:$0xff] (!%p304_p10)  ;;  %s1088_s22 = scalar_lea.vmem (!%p304_p10), %s1087_s21, 2048 }
  0x14   : > { %950 = vmatpush3.bf16.msra.mxu0 (!%p304_p10), %v1070_v1  ;;  %v911_v48 = vld [vmem:[%s1391_s7] ss:$0 sm:$0xff] (!%p304_p10) }
  0x15   : > { %951 = vmatprep.subr.bf16.mxu0 (!%p304_p10), %v1071_v2  ;;  %v991_v49 = vadd.f32 (!%p304_p10), %v911_v48, %v906_v47 }
  0x16   : > { %s352_s23 = scalar_select %p351_p11, %s1152_s30, 1 }
  0x18   : > { %s925_s26 = sshll.u32 %s352_s23, 5  ;;  %952 = vmatpush3.bf16.msra.mxu0 %v1071_v2  ;;  %s347_s23 = sand.u32 1, %s1144_s28  }
  0x19   : > { %s358_s14 = scalar_lea.vmem %s1384_s0, %s925_s26  ;;  %s1289_s24 = scalar_lea.vmem %s1385_s1, %s925_s26  ;;  %953 = vmatprep.subr.bf16.mxu0 %v1072_v4 }
  0x1a   : > { %v1074_v3 = vld [vmem:[%s358_s14] sm:$0xff]   ;;  %v1075_v7 = vld [vmem:[%s358_s14 + $0x8] sm:$0xff]   ;;  %v1076_v8 = vld [vmem:[%s358_s14 + $0x10] sm:$0xff]   ;;  %s887_s25 = sshll.u32 %s347_s23, 6  ;;  %s1338_s30 = scalar_lea.sflag [#allocation3], %s347_s23 }
  0x1b   : > { %957 = vmatprep.mubr.msk.bf16.mxu0 %vm443_vm0, %v1074_v3  ;;  %v1077_v9 = vld [vmem:[%s358_s14 + $0x18] sm:$0xff]   ;;  %v1078_v43 = vld [vmem:[%s1289_s24] sm:$0xff]   ;;  %v1079_v44 = vld [vmem:[%s1289_s24 + $0x8] sm:$0xff]  }
  0x1c   : > { %954 = vmatpush3.bf16.msra.mxu0 %v1072_v4  ;;  %v1080_v45 = vld [vmem:[%s1289_s24 + $0x10] sm:$0xff]   ;;  %v1081_v46 = vld [vmem:[%s1289_s24 + $0x18] sm:$0xff]   ;;  %s349_s24 = scalar_lea.vmem [#allocation2], %s887_s25 }
  0x1d   : > { %1009 = vmatprep.subr.msk.bf16.mxu0 %vm456_vm1, %v1073_v5  ;;  %s785_s26 = sshll.u32 %s349_s24, 4  ;;  %s1331_s26 = int_to_ptr.vmem [resolvable:$true] %s785_s26 }
  0x1e   : > { %s1082_s14 = scalar_lea.vmem %s1331_s26, 1024  ;;  %p1089_p1 = scmp.lt.s32.totalorder %s1331_s26, %s1087_s21 }
  0x1f   : > { %p1083_p12 = scmp.ne.s32.totalorder %s1331_s26, %s1082_s14  ;;  %p1090_p2 = scmp.lt.s32.totalorder %s1088_s22, %s1082_s14 }
  0x20   : > { %956 = vmatpush3.bf16.msra.mxu0 %v458_v6 }
  0x21   : > { %p1084_p13 = pnand %p1083_p12, %p1250_p4  ;;  %p1091_p3 = por %p1090_p2, %p1089_p1 }
  0x23   : > { %958 = vmatmul.mubr.msk.bf16.vlgmr.msra.gmra.mrb[0].mxu0 %vm443_vm0, %v1075_v7  ;;  %p1085_p0 = pneg %p1084_p13 }
  0x24   : > { %961 = vmatprep.mubr.msk.bf16.mxu0 %vm443_vm0, %v1076_v8 }
  0x25   : > { %p1092_p5 = pnand %p1091_p3, %p1085_p0 }
  0x2b   : > { %962 = vmatmul.mubr.msk.bf16.gmra.mrb[4].mxu0 %vm443_vm0, %v1077_v9 }
  0xf6   : > { %v959_v15 = vpop.f32.mrb[0].mxu0 }
  0xf7   : > { %v503_v16 = vadd.f32 %v959_v15, %v892_v14  ;;  %v494_v17 = vpop.f32.mrb[1].mxu0 }
  0xf8   : > { %v495_v18 = vadd.f32 %v892_v14, %v494_v17  ;;  %v960_v19 = vpop.f32.mrb[2].mxu0 }
  0xf9   : > { %v506_v20 = vadd.f32 %v960_v19, %v892_v14  ;;  %v497_v21 = vpop.f32.mrb[3].mxu0  ;;  %v527_v23 = vmax.f32 %v503_v16, 0.0 }
  0xfa   : > { %v498_v22 = vadd.f32 %v892_v14, %v497_v21  ;;  %v525_v25 = vmax.f32 %v495_v18, 0.0 }
  0xfb   : > { %v528_v24 = vmax.f32 %v506_v20, 0.0 }
  0xfc   : > { %v526_v26 = vmax.f32 %v498_v22, 0.0 }
  0xfd   : > { %v534_v27 = vpack.c.bf16 %v528_v24, %v527_v23 }
  0xfe   : > { %v963_v28 = vpop.f32.mrb[4].mxu0  ;;  %v533_v29 = vpack.c.bf16 %v526_v26, %v525_v25 }
  0xff   : > { %v519_v30 = vadd.f32 %v963_v28, %v892_v14  ;;  %v510_v31 = vpop.f32.mrb[5].mxu0 }
 0x100   : > { %v511_v32 = vadd.f32 %v892_v14, %v510_v31  ;;  %v964_v33 = vpop.f32.mrb[6].mxu0  ;;  %967 = vmatprep.mubr.msk.bf16.mxu1 %vm545_vm3, %v533_v29 }
 0x101   : > { %v522_v34 = vadd.f32 %v964_v33, %v892_v14  ;;  %v513_v35 = vpop.f32.mrb[7].mxu0  ;;  %968 = vmatmul.mubr.msk.bf16.vlgmr.msra.gmra.mrb[0].mxu1 %vm545_vm3, %v534_v27  ;;  %v531_v37 = vmax.f32 %v519_v30, 0.0 }
 0x102   : > { %v514_v36 = vadd.f32 %v892_v14, %v513_v35  ;;  %976 = vmatpush3.bf16.msra.mxu1 %v677_v13  ;;  %v529_v39 = vmax.f32 %v511_v32, 0.0 }
 0x103   : > { %v532_v38 = vmax.f32 %v522_v34, 0.0 }
 0x104   : > { %v530_v40 = vmax.f32 %v514_v36, 0.0 }
 0x105   : > { %v536_v41 = vpack.c.bf16 %v532_v38, %v531_v37 }
 0x106   : > { %v535_v42 = vpack.c.bf16 %v530_v40, %v529_v39 }
 0x108   : > { %971 = vmatprep.mubr.msk.bf16.mxu1 %vm545_vm3, %v535_v42 }
 0x109   : > { %972 = vmatmul.mubr.msk.bf16.gmra.mrb[4].mxu1 %vm545_vm3, %v536_v41 }
 0x10a   : > { %977 = vmatprep.mubr.msk.bf16.mxu1 %vm662_vm4, %v1078_v43 }
 0x111   : > { %978 = vmatmul.mubr.msk.bf16.vlgmr.msra.gmra.mrb[0].mxu1 %vm662_vm4, %v1079_v44 }
 0x112   : > { %981 = vmatprep.mubr.msk.bf16.mxu1 %vm662_vm4, %v1080_v45 }
 0x119   : > { %982 = vmatmul.mubr.msk.bf16.gmra.mrb[4].mxu1 %vm662_vm4, %v1081_v46 }
 0x1e4   : > { %v979_v50 = vpop.f32.mrb[0].mxu1 }
 0x1e5   : > { %v985_v51 = vadd.f32 %v979_v50, %v906_v47  ;;  %v713_v52 = vpop.f32.mrb[1].mxu1 }
 0x1e6   : > { %v987_v53 = vadd.f32 %v906_v47, %v713_v52  ;;  %v980_v54 = vpop.f32.mrb[2].mxu1 }
 0x1e7   : > { %v986_v55 = vadd.f32 %v985_v51, %v911_v48  ;;  %v990_v56 = vadd.f32 %v991_v49, %v980_v54  ;;  %v716_v57 = vpop.f32.mrb[3].mxu1 }
 0x1e8   : > { %v988_v58 = vadd.f32 %v987_v53, %v911_v48  ;;  %v992_v59 = vadd.f32 %v991_v49, %v716_v57 }
 0x1e9   : > { %v754_v60 = vmax.f32 %v986_v55, 0.0  ;;  %v755_v61 = vmax.f32 %v990_v56, 0.0 }
 0x1ea   : > { %v752_v62 = vmax.f32 %v988_v58, 0.0  ;;  %v753_v63 = vmax.f32 %v992_v59, 0.0 }
 0x1eb   : > { %763 = vst.msk [vmem:[%s349_s24 + $0x10] sm:$0xff] %vm760_vm5, %v754_v60  ;;  %764 = vst.msk [vmem:[%s349_s24 + $0x18] sm:$0xff] %vm760_vm5, %v755_v61 }
 0x1ec   : > { %761 = vst.msk [vmem:[%s349_s24] sm:$0xff] %vm760_vm5, %v752_v62  ;;  %762 = vst.msk [vmem:[%s349_s24 + $0x8] sm:$0xff] %vm760_vm5, %v753_v63  ;;  %v983_v0 = vpop.f32.mrb[4].mxu1 }
 0x1ed   : > { %v994_v1 = vadd.f32 %v991_v49, %v983_v0  ;;  %v729_v2 = vpop.f32.mrb[5].mxu1 }
 0x1ee   : > { %v996_v3 = vadd.f32 %v991_v49, %v729_v2  ;;  %v984_v4 = vpop.f32.mrb[6].mxu1 }
 0x1ef   : > { %v758_v5 = vmax.f32 %v994_v1, 0.0  ;;  %v998_v6 = vadd.f32 %v991_v49, %v984_v4  ;;  %v732_v7 = vpop.f32.mrb[7].mxu1 }
 0x1f0   : > { %v756_v8 = vmax.f32 %v996_v3, 0.0  ;;  %v1000_v9 = vadd.f32 %v991_v49, %v732_v7 }
 0x1f1   : > { %767 = vst.msk [vmem:[%s349_s24 + $0x30] sm:$0xff] %vm760_vm5, %v758_v5  ;;  %v759_v10 = vmax.f32 %v998_v6, 0.0 }
 0x1f2   : > { %765 = vst.msk [vmem:[%s349_s24 + $0x20] sm:$0xff] %vm760_vm5, %v756_v8  ;;  %v757_v11 = vmax.f32 %v1000_v9, 0.0 }
 0x1f3   : > { %768 = vst.msk [vmem:[%s349_s24 + $0x38] sm:$0xff] %vm760_vm5, %v759_v10 }
 0x1f4   : > { %766 = vst.msk [vmem:[%s349_s24 + $0x28] sm:$0xff] %vm760_vm5, %v757_v11 }
 0x1f5   : > { %1095 = shalt.err (!%p1092_p5)
}
 0x1f6   : > { %s1096_s23 = scalar_lea.hbm %s1329_s19, 1024  ;;  %s1100_s11 = scalar_lea.hbm %s1392_s8, 2048 }
 0x1f7   : > { %p1097_p6 = scmp.ne.s32.totalorder %s1329_s19, %s1096_s23  ;;  %p1101_p10 = scmp.lt.u32.totalorder %s1329_s19, %s1392_s8 }
 0x1f8   : > { %p1102_p11 = scmp.lt.u32.totalorder %s1100_s11, %s1096_s23  ;;  %p1104_p13 = scmp.lt.u32.totalorder %s1096_s23, %s1329_s19 }
 0x1f9   : > { %p1098_p7 = pnand %p1097_p6, %p1250_p4 }
 0x1fa   : > { %p1103_p12 = por %p1102_p11, %p1101_p10 }
 0x1fb   : > { %p1099_p9 = pneg %p1098_p7 }
 0x1fc   : > { %p1105_p0 = por %p1104_p13, %p1103_p12 }
 0x1fe   : > { %p1106_p1 = pnand %p1105_p0, %p1099_p9 }
 0x200   : > { %1109 = shalt.err (!%p1106_p1)
}
 0x201   : > { %s1163_s14 = smov 128   ;;  %s1164_s20 = smov 8  }
 0x202   : > { %1012 = dma.vmem_to_hbm [thread:$0]  (%p1250_p4), %s1331_s26, 1024, %s1329_s19, %s1338_s30, %s1163_s14, %s1163_s14, %s1164_s20  }
 0x203 PF: > { %p1018_p2 = scmp.ge.s32.totalorder %s1160_s10, 2  ;;  %s800_s21 = sand.u32 1, %s1140_s27  }
 0x204   : > { %s801_s22 = scalar_lea.sflag [#allocation3], %s800_s21 }
 0x205   : > { %p1015_p3 = pnand %p1018_p2, %p1257_p8 }
 0x207   : > { %1135 = dma.done.wait (!%p1015_p3), %s801_s22, 1024  }
 0x208   : > { %1137 = vsyncadd (!%p1015_p3), %s801_s22, 4294966272  ;;  %s21_s10 = sadd.s32 1, %s1160_s10   ;;  %s1395_s27 = smov %s1144_s28 }
 0x209   : > { %p18_p5 = scmp.ge.s32.totalorder %s21_s10, 4   ;;  %s1396_s28 = smov %s1148_s29 }
 0x20a   : > { %s1397_s29 = smov %s1263_s18  ;;  %s1398_s30 = smov %s1156_s9 }
 0x20b   : > { %s1399_s9 = smov %s1401_s13  ;;  %20 = sbr.rel (!%p18_p5) target bundleno = 4 (0x4), region = 90 }
 0x212   :  { %806 = vsyncpa [#allocation3], 1 }
 0x213   :  { %808 = vsyncpa [#allocation3 + $0x1], 1 }

</bundles_post_ra>
